<compile_context>
chip_gen: v6e
topology: v6e:2x2x1
jax: 0.10.0
libtpu: 0.0.40
codegen_flags: <defaults>
</compile_context>

<pallas_src>
import functools

import jax
import jax.numpy as jnp
from jax.experimental import pallas as pl
from jax.experimental.pallas import tpu as pltpu

_LANES = 128
_MAX_TILE_ROWS = 2048  # 2048x128 f32 = 1 MiB per block per input; 2 inputs x 2 bufs = 4 MiB VMEM


def _bce_partial_kernel(p_ref, g_ref, out_ref, *, apply_sigmoid, valid_rows,
                        tile_rows, blocks_per_shard, needs_mask):
    shard = pl.program_id(0)
    i = pl.program_id(1)

    @pl.when(i == 0)
    def _():
        out_ref[...] = jnp.zeros_like(out_ref)

    x = p_ref[...].astype(jnp.float32)
    gt = g_ref[...].astype(jnp.float32)

    if apply_sigmoid:
        # Fused sigmoid + BCE on logits:
        #   log(sigmoid(x))     = -(max(-x, 0) + log(1 + exp(-|x|)))
        #   log(1 - sigmoid(x)) = -(max( x, 0) + log(1 + exp(-|x|)))
        # One exp + one log per element (vs exp + recip + two logs), and no
        # catastrophic cancellation in 1 - sigmoid(x). The -100 clamp mirrors
        # PyTorch's per-log-term clamp in F.binary_cross_entropy.
        softplus = jnp.log(1.0 + jnp.exp(-jnp.abs(x)))
        log_p = jnp.maximum(-(jnp.maximum(-x, 0.0) + softplus), -100.0)
        log_1mp = jnp.maximum(-(jnp.maximum(x, 0.0) + softplus), -100.0)
    else:
        # Inputs are already probabilities (softmax path).
        log_p = jnp.maximum(jnp.log(x), -100.0)
        log_1mp = jnp.maximum(jnp.log(1.0 - x), -100.0)

    loss = -(gt * log_p + (1.0 - gt) * log_1mp)

    if needs_mask:
        # Zero out rows past the logical end of the data: ragged last block and
        # out-of-range shard blocks that were clamped in the index_map.
        logical_block = shard * blocks_per_shard + i
        row_ids = (jax.lax.broadcasted_iota(jnp.int32, loss.shape, 0)
                   + logical_block * tile_rows)
        loss = jnp.where(row_ids < valid_rows, loss, 0.0)

    # Per-lane partial sums (VPU); the single cross-lane reduce is done in the wrapper.
    out_ref[...] += jnp.sum(loss, axis=0, keepdims=True)


def bce_loss(predict, gt, activation="sigmoid", is_average=True):
    """Pallas TPU equivalent of BCELoss.forward(predict, gt, activation, is_average)."""
    apply_sigmoid = activation == "sigmoid"
    if activation == "softmax":
        # Channel softmax (axis=1, NCHW) is cheap XLA glue; the elementwise BCE +
        # full reduction hot path stays in the Pallas kernel.
        predict = jax.nn.softmax(predict.astype(jnp.float32), axis=1)

    n_valid = predict.size
    p = predict.reshape(-1)  # free bitcast for contiguous inputs
    g = gt.reshape(-1)

    if n_valid % _LANES != 0:
        # TODO(synk): <128-element tail; this is the only path that materializes a
        # padded copy. The padding pair (prob==1 / logit 100, gt==1) contributes 0 loss.
        pad = _LANES - n_valid % _LANES
        pad_p = 100.0 if apply_sigmoid else 1.0
        p = jnp.pad(p, (0, pad), constant_values=pad_p)
        g = jnp.pad(g, (0, pad), constant_values=1.0)

    n_rows = p.shape[0] // _LANES
    p2 = p.reshape(n_rows, _LANES)
    g2 = g.reshape(n_rows, _LANES)

    if n_rows <= _MAX_TILE_ROWS:
        tile_rows = n_rows            # single full-extent block (block == dim is allowed)
    else:
        tile_rows = _MAX_TILE_ROWS
    n_blocks = pl.cdiv(n_rows, tile_rows)

    # Shard the reduction stream across both TensorCores on v7x; harmless on 1-TC chips.
    num_shards = 2 if n_blocks >= 2 else 1
    blocks_per_shard = pl.cdiv(n_blocks, num_shards)
    overhang = num_shards * blocks_per_shard > n_blocks
    needs_mask = num_shards * blocks_per_shard * tile_rows != n_rows

    if overhang:
        def in_map(c, i):
            # Clamp out-of-range shard blocks onto a valid block; their contribution
            # is zeroed by the in-kernel row mask.
            return (jnp.minimum(c * blocks_per_shard + i, n_blocks - 1), 0)
    else:
        def in_map(c, i):
            return (c * blocks_per_shard + i, 0)

    kernel = functools.partial(
        _bce_partial_kernel,
        apply_sigmoid=apply_sigmoid,
        valid_rows=n_rows,
        tile_rows=tile_rows,
        blocks_per_shard=blocks_per_shard,
        needs_mask=needs_mask,
    )

    partials = pl.pallas_call(
        kernel,
        out_shape=jax.ShapeDtypeStruct((num_shards, _LANES), jnp.float32),
        grid_spec=pltpu.PrefetchScalarGridSpec(
            num_scalar_prefetch=0,
            grid=(num_shards, blocks_per_shard),
            in_specs=[
                pl.BlockSpec((tile_rows, _LANES), in_map),
                pl.BlockSpec((tile_rows, _LANES), in_map),
            ],
            out_specs=pl.BlockSpec((1, _LANES), lambda c, i: (c, 0)),
        ),
        compiler_params=pltpu.CompilerParams(
            dimension_semantics=("parallel", "arbitrary"),
        ),
    )(p2, g2)

    total = jnp.sum(partials)   # one tiny cross-lane reduce in XLA
    if is_average:
        total = total / jnp.float32(n_valid)
    return total


def _ref_bce(prob, gt, average):
    """Pure-JAX reference with PyTorch F.binary_cross_entropy semantics (-100 clamp)."""
    l = -(gt * jnp.maximum(jnp.log(prob), -100.0)
          + (1.0 - gt) * jnp.maximum(jnp.log(1.0 - prob), -100.0))
    return jnp.mean(l) if average else jnp.sum(l)


if __name__ == "__main__":
    key = jax.random.PRNGKey(0)
    k1, k2, k3, k4 = jax.random.split(key, 4)

    # Small NCHW shape consistent with a segmentation loss.
    N, C, H, W = 2, 4, 16, 16
    predict = jax.random.normal(k1, (N, C, H, W), dtype=jnp.float32)
    gt = (jax.random.uniform(k2, (N, C, H, W)) > 0.5).astype(jnp.float32)

    # 1) sigmoid + mean (default BCELoss path)
    loss = jax.block_until_ready(bce_loss(predict, gt, "sigmoid", True))
    ref = _ref_bce(jax.nn.sigmoid(predict), gt, True)
    assert jnp.allclose(loss, ref, rtol=1e-5, atol=1e-6), (loss, ref)

    # 2) softmax + sum
    loss_sm = jax.block_until_ready(bce_loss(predict, gt, "softmax", False))
    ref_sm = _ref_bce(jax.nn.softmax(predict, axis=1), gt, False)
    assert jnp.allclose(loss_sm, ref_sm, rtol=1e-4, atol=1e-4), (loss_sm, ref_sm)

    # 3) row count not a multiple of 8 -> single full-extent block
    p3 = jax.random.normal(k3, (2, 3, 10, 32), dtype=jnp.float32)
    g3 = (jax.random.uniform(k4, (2, 3, 10, 32)) > 0.5).astype(jnp.float32)
    loss3 = jax.block_until_ready(bce_loss(p3, g3, "sigmoid", True))
    ref3 = _ref_bce(jax.nn.sigmoid(p3), g3, True)
    assert jnp.allclose(loss3, ref3, rtol=1e-5, atol=1e-6), (loss3, ref3)

    # 4) multi-block case -> exercises 2-way TensorCore sharding, index clamp and tail mask
    p4 = jax.random.normal(k1, (2, 4, 205, 320), dtype=jnp.float32)
    g4 = (jax.random.uniform(k2, (2, 4, 205, 320)) > 0.5).astype(jnp.float32)
    loss4 = jax.block_until_ready(bce_loss(p4, g4, "sigmoid", True))
    ref4 = _ref_bce(jax.nn.sigmoid(p4), g4, True)
    assert jnp.allclose(loss4, ref4, rtol=1e-5, atol=1e-6), (loss4, ref4)

    print("KERNEL_OK")
</pallas_src>

<mosaic_0001>
module attributes {stable_mosaic.version = 11 : i64} {
  func.func @_bce_partial_kernel(%arg0: i32, %arg1: i32, %arg2: memref<16x128xf32, #tpu.memory_space<vmem>>, %arg3: memref<16x128xf32, #tpu.memory_space<vmem>>, %arg4: memref<1x128xf32, #tpu.memory_space<vmem>>) attributes {dimension_semantics = [#tpu.dimension_semantics<parallel>, #tpu.dimension_semantics<arbitrary>], iteration_bounds = array<i64: 1, 1>, scalar_prefetch = 0 : i64, scratch_operands = 0 : i64, tpu.core_type = #tpu.core_type<tc>, window_params = [{transform_indices = @transform_0, window_bounds = array<i64: 16, 128>}, {transform_indices = @transform_1, window_bounds = array<i64: 16, 128>}, {transform_indices = @transform_2, window_bounds = array<i64: 1, 128>}]} {
    %c0_i32 = arith.constant 0 : i32
    %0 = arith.cmpi eq, %arg1, %c0_i32 : i32
    %1 = arith.extui %0 : i1 to i32
    %c0_i32_0 = arith.constant 0 : i32
    %2 = arith.cmpi ne, %1, %c0_i32_0 : i32
    scf.if %2 {
      %cst_19 = arith.constant 0.000000e+00 : f32
      %40 = vector.broadcast %cst_19 : f32 to vector<1x128xf32>
      %c0_20 = arith.constant 0 : index
      %c0_21 = arith.constant 0 : index
      %41 = vector.load %arg4[%c0_20, %c0_21] : memref<1x128xf32, #tpu.memory_space<vmem>>, vector<1x128xf32>
      tpu.vector_store %arg4[%c0_20, %c0_21], %40 {strides = array<i32>} : memref<1x128xf32, #tpu.memory_space<vmem>>, vector<1x128xf32>,
    } else {
    }
    %c0 = arith.constant 0 : index
    %c0_1 = arith.constant 0 : index
    %3 = vector.load %arg2[%c0, %c0_1] : memref<16x128xf32, #tpu.memory_space<vmem>>, vector<16x128xf32>
    %c0_2 = arith.constant 0 : index
    %c0_3 = arith.constant 0 : index
    %4 = vector.load %arg3[%c0_2, %c0_3] : memref<16x128xf32, #tpu.memory_space<vmem>>, vector<16x128xf32>
    %5 = math.absf %3 : vector<16x128xf32>
    %cst = arith.constant 0.000000e+00 : f32
    %6 = vector.broadcast %cst : f32 to vector<16x128xf32>
    %7 = arith.subf %6, %5 : vector<16x128xf32>
    %8 = math.exp %7 : vector<16x128xf32>
    %cst_4 = arith.constant 1.000000e+00 : f32
    %9 = vector.broadcast %cst_4 : f32 to vector<16x128xf32>
    %10 = arith.addf %9, %8 : vector<16x128xf32>
    %11 = math.log %10 : vector<16x128xf32>
    %cst_5 = arith.constant 0.000000e+00 : f32
    %12 = vector.broadcast %cst_5 : f32 to vector<16x128xf32>
    %13 = arith.subf %12, %3 : vector<16x128xf32>
    %cst_6 = arith.constant 0.000000e+00 : f32
    %14 = vector.broadcast %cst_6 : f32 to vector<16x128xf32>
    %15 = arith.maximumf %13, %14 : vector<16x128xf32>
    %16 = arith.addf %15, %11 : vector<16x128xf32>
    %cst_7 = arith.constant 0.000000e+00 : f32
    %17 = vector.broadcast %cst_7 : f32 to vector<16x128xf32>
    %18 = arith.subf %17, %16 : vector<16x128xf32>
    %cst_8 = arith.constant -1.000000e+02 : f32
    %19 = vector.broadcast %cst_8 : f32 to vector<16x128xf32>
    %20 = arith.maximumf %18, %19 : vector<16x128xf32>
    %cst_9 = arith.constant 0.000000e+00 : f32
    %21 = vector.broadcast %cst_9 : f32 to vector<16x128xf32>
    %22 = arith.maximumf %3, %21 : vector<16x128xf32>
    %23 = arith.addf %22, %11 : vector<16x128xf32>
    %cst_10 = arith.constant 0.000000e+00 : f32
    %24 = vector.broadcast %cst_10 : f32 to vector<16x128xf32>
    %25 = arith.subf %24, %23 : vector<16x128xf32>
    %cst_11 = arith.constant -1.000000e+02 : f32
    %26 = vector.broadcast %cst_11 : f32 to vector<16x128xf32>
    %27 = arith.maximumf %25, %26 : vector<16x128xf32>
    %28 = arith.mulf %4, %20 : vector<16x128xf32>
    %cst_12 = arith.constant 1.000000e+00 : f32
    %29 = vector.broadcast %cst_12 : f32 to vector<16x128xf32>
    %30 = arith.subf %29, %4 : vector<16x128xf32>
    %31 = arith.mulf %30, %27 : vector<16x128xf32>
    %32 = arith.addf %28, %31 : vector<16x128xf32>
    %cst_13 = arith.constant 0.000000e+00 : f32
    %33 = vector.broadcast %cst_13 : f32 to vector<16x128xf32>
    %34 = arith.subf %33, %32 : vector<16x128xf32>
    %c0_14 = arith.constant 0 : index
    %c0_15 = arith.constant 0 : index
    %35 = vector.load %arg4[%c0_14, %c0_15] : memref<1x128xf32, #tpu.memory_space<vmem>>, vector<1x128xf32>
    %cst_16 = arith.constant dense<0.000000e+00> : vector<128xf32>
    %36 = vector.multi_reduction <add>, %34, %cst_16 [0] : vector<16x128xf32> to vector<128xf32>
    %37 = vector.shape_cast %36 : vector<128xf32> to vector<1x128xf32>
    %38 = arith.addf %35, %37 : vector<1x128xf32>
    %c0_17 = arith.constant 0 : index
    %c0_18 = arith.constant 0 : index
    %39 = vector.load %arg4[%c0_17, %c0_18] : memref<1x128xf32, #tpu.memory_space<vmem>>, vector<1x128xf32>
    tpu.vector_store %arg4[%c0_17, %c0_18], %38 {strides = array<i32>} : memref<1x128xf32, #tpu.memory_space<vmem>>, vector<1x128xf32>,
    return
  }
  func.func @transform_0(%arg0: i32, %arg1: i32) -> (i32, i32) {
    %c1_i32 = arith.constant 1 : i32
    %0 = arith.muli %arg0, %c1_i32 : i32
    %1 = arith.addi %0, %arg1 : i32
    %c0_i32 = arith.constant 0 : i32
    %c0_i32_0 = arith.constant 0 : i32
    return %1, %c0_i32 : i32, i32
  }
  func.func @transform_1(%arg0: i32, %arg1: i32) -> (i32, i32) {
    %c1_i32 = arith.constant 1 : i32
    %0 = arith.muli %arg0, %c1_i32 : i32
    %1 = arith.addi %0, %arg1 : i32
    %c0_i32 = arith.constant 0 : i32
    %c0_i32_0 = arith.constant 0 : i32
    return %1, %c0_i32 : i32, i32
  }
  func.func @transform_2(%arg0: i32, %arg1: i32) -> (i32, i32) {
    %c0_i32 = arith.constant 0 : i32
    %c0_i32_0 = arith.constant 0 : i32
    return %arg0, %c0_i32 : i32, i32
  }
}

</mosaic_0001>

<bundles_post_ra>
// kernel: tpu_custom_call.1
= control target key start
LH: loop header
LB: loop body
LE: loop exit
PB: predicated region body
PF: predicated region fallthrough
CT: control target
= control target key end

     0   :  { %7 = vsyncpa [#allocation3], 0  ;;  %s239_s0 = inlined_call_operand.hbm [shape: f32[16,128], index: 0, kind: input, shape index: {}]   ;;  %s240_s1 = inlined_call_operand.hbm [shape: f32[16,128], index: 1, kind: input, shape index: {}]   ;;  %s241_s2 = inlined_call_operand.hbm [shape: f32[1,128], index: 2, kind: output, shape index: {}]  }
   0x1   :  { %8 = vsyncpa [#allocation6], 0 }
   0x2   :  { %9 = vsyncpa [#allocation4], 0  ;;  %s209_s9 = smov [#allocation2]  }
   0x3   :  { %s19_s10 = sshll.u32 %s209_s9, 4  ;;  %s20_s10 = int_to_ptr.vmem [resolvable:$true] %s19_s10 }
   0x4   :  { %s151_s11 = scalar_lea.vmem %s20_s10, 256  ;;  %p156_p1 = scmp.lt.s32.totalorder %s20_s10, %s20_s10 }
   0x5   :  { %p152_p0 = scmp.ne.s32.totalorder %s20_s10, %s151_s11  ;;  %p157_p2 = scmp.lt.s32.totalorder %s151_s11, %s151_s11 }
   0x7   :  { %p158_p3 = por %p157_p2, %p156_p1 }
   0x9   :  { %p159_p4 = pnand %p158_p3, %p152_p0 }
   0xb   :  { %162 = shalt.err (!%p159_p4)
}
   0xc   :  { %s210_s12 = smov 128   ;;  %s211_s13 = smov 8  }
   0xd   :  { %25 = dma.hbm_to_vmem [thread:$0]  %s239_s0, 256, %s20_s10, [#allocation3], %s210_s12, %s210_s12, %s211_s13  }
   0xe   :  { %s212_s16 = smov [#allocation5]  }
   0xf   :  { %s35_s17 = sshll.u32 %s212_s16, 4  ;;  %s36_s17 = int_to_ptr.vmem [resolvable:$true] %s35_s17 }
  0x10   :  { %s171_s18 = scalar_lea.vmem %s36_s17, 256  ;;  %p176_p6 = scmp.lt.s32.totalorder %s36_s17, %s36_s17 }
  0x11   :  { %p172_p5 = scmp.ne.s32.totalorder %s36_s17, %s171_s18  ;;  %p177_p7 = scmp.lt.s32.totalorder %s171_s18, %s171_s18 }
  0x13   :  { %p178_p8 = por %p177_p7, %p176_p6 }
  0x15   :  { %p179_p9 = pnand %p178_p8, %p172_p5 }
  0x17   :  { %182 = shalt.err (!%p179_p9)
}
  0x18   :  { %41 = dma.hbm_to_vmem [thread:$0]  %s240_s1, 256, %s36_s17, [#allocation6], %s210_s12, %s210_s12, %s211_s13  }
  0x19   :  { %203 = dma.done.wait [#allocation3], 256  }
  0x1a   :  { %204 = vsyncadd [#allocation3], 4294967040 }
  0x1b   :  { %205 = dma.done.wait [#allocation6], 256  }
  0x1c   :  { %206 = vsyncadd [#allocation6], 4294967040  ;;  %v213_v0 = vmov 0.0   ;;  %v57_v1 = vld [vmem:[#allocation2] sm:$0xff]  ;;  %v58_v2 = vld [vmem:[#allocation2 + $0x8] sm:$0xff]  ;;  %s214_s0 = smov [#allocation7]  }
  0x1d   :  { %56 = vst [vmem:[#allocation7] sm:$0x1] %v213_v0  ;;  %v61_v3 = vand.u32 2147483647, %v57_v1  ;;  %v62_v4 = vand.u32 2147483647, %v58_v2 }
  0x1e   :  { %v75_v13 = vsub.f32 0.0, %v57_v1  ;;  %v76_v14 = vsub.f32 0.0, %v58_v2  ;;  %v85_v16 = vmax.f32 %v57_v1, 0.0  ;;  %v86_v19 = vmax.f32 %v58_v2, 0.0  ;;  %v59_v22 = vld [vmem:[#allocation5] sm:$0xff]  ;;  %v60_v24 = vld [vmem:[#allocation5 + $0x8] sm:$0xff] }
  0x1f   :  { %v63_v5 = vsub.f32 0.0, %v61_v3  ;;  %v64_v6 = vsub.f32 0.0, %v62_v4  ;;  %v95_v31 = vsub.f32 1.0, %v59_v22  ;;  %v96_v34 = vsub.f32 1.0, %v60_v24  ;;  %s119_s1 = sshll.u32 %s214_s0, 4  ;;  %s120_s1 = int_to_ptr.vmem [resolvable:$true] %s119_s1 }
  0x20   :  { %v77_v15 = vmax.f32 %v75_v13, 0.0  ;;  %v78_v18 = vmax.f32 %v76_v14, 0.0  ;;  %s183_s21 = scalar_lea.vmem %s120_s1, 16  ;;  %s187_s22 = scalar_lea.vmem %s120_s1, 32 }
  0x21   :  { %v65_v7 = vmul.f32 1.442695, %v63_v5  ;;  %v67_v8 = vmul.f32 1.442695, %v64_v6  ;;  %p184_p10 = scmp.ne.s32.totalorder %s120_s1, %s183_s21  ;;  %p188_p11 = scmp.lt.s32.totalorder %s120_s1, %s120_s1 }
  0x22   :  { %p189_p12 = scmp.lt.s32.totalorder %s187_s22, %s183_s21 }
  0x23   :  { %135 = vpow2.f32 %v65_v7 }
  0x24   :  { %137 = vpow2.f32 %v67_v8  ;;  %v103_v53 = vld [vmem:[#allocation7] sm:$0x1]  ;;  %p190_p13 = por %p189_p12, %p188_p11 }
  0x26   :  { %p191_p0 = pnand %p190_p13, %p184_p10 }
  0x30   :  { %v136_v9 = vpop.eup %135 }
  0x31   :  { %v138_v10 = vpop.eup %137  ;;  %v69_v11 = vadd.f32 1.0, %v136_v9 }
  0x32   :  { %v70_v12 = vadd.f32 1.0, %v138_v10 }
  0x33   :  { %139 = vlog2.f32 %v69_v11 }
  0x34   :  { %141 = vlog2.f32 %v70_v12 }
  0x40   :  { %v140_v17 = vpop.eup %139 }
  0x41   :  { %v142_v20 = vpop.eup %141  ;;  %v72_v21 = vmul.f32 0.6931472, %v140_v17 }
  0x42   :  { %v74_v23 = vmul.f32 0.6931472, %v142_v20 }
  0x43   :  { %v79_v25 = vadd.f32 %v77_v15, %v72_v21  ;;  %v87_v26 = vadd.f32 %v85_v16, %v72_v21 }
  0x44   :  { %v80_v27 = vadd.f32 %v78_v18, %v74_v23  ;;  %v88_v28 = vadd.f32 %v86_v19, %v74_v23 }
  0x45   :  { %v81_v29 = vsub.f32 0.0, %v79_v25  ;;  %v89_v30 = vsub.f32 0.0, %v87_v26 }
  0x46   :  { %v82_v32 = vsub.f32 0.0, %v80_v27  ;;  %v90_v33 = vsub.f32 0.0, %v88_v28 }
  0x47   :  { %v83_v35 = vmax.f32 %v81_v29, -100.0  ;;  %v91_v36 = vmax.f32 %v89_v30, -100.0 }
  0x48   :  { %v84_v37 = vmax.f32 %v82_v32, -100.0  ;;  %v92_v38 = vmax.f32 %v90_v33, -100.0 }
  0x49   :  { %v93_v39 = vmul.f32 %v83_v35, %v59_v22  ;;  %v97_v40 = vmul.f32 %v95_v31, %v91_v36 }
  0x4a   :  { %v94_v41 = vmul.f32 %v84_v37, %v60_v24  ;;  %v98_v42 = vmul.f32 %v96_v34, %v92_v38 }
  0x4b   :  { %v99_v43 = vadd.f32 %v97_v40, %v93_v39 }
  0x4c   :  { %v100_v44 = vadd.f32 %v98_v42, %v94_v41 }
  0x4d   :  { %v101_v45 = vsub.f32 0.0, %v99_v43 }
  0x4e   :  { %v102_v46 = vsub.f32 0.0, %v100_v44 }
  0x50   :  { %v104_v47 = vadd.f32 %v102_v46, %v101_v45 }
  0x52   :  { %v105_v48 = vrot.slane %v104_v47, 4 }
  0x54   :  { %v106_v49 = vadd.f32 %v105_v48, %v104_v47 }
  0x56   :  { %v107_v50 = vrot.slane %v106_v49, 2 }
  0x58   :  { %v108_v51 = vadd.f32 %v107_v50, %v106_v49 }
  0x5a   :  { %v109_v52 = vrot.slane %v108_v51, 1 }
  0x5c   :  { %v110_v54 = vadd.f32 %v109_v52, %v108_v51 }
  0x5e   :  { %v111_v55 = vadd.f32 %v110_v54, %v103_v53 }
  0x60   :  { %112 = vst [vmem:[#allocation7] sm:$0x1] %v111_v55 }
  0x61   :  { %194 = shalt.err (!%p191_p0)
}
  0x62   :  { %122 = dma.vmem_to_hbm [thread:$0]  %s120_s1, 16, %s241_s2, [#allocation4]  }
  0x63   :  { %207 = dma.done.wait [#allocation4], 16  }
  0x64   :  { %208 = vsyncadd [#allocation4], 4294967280 }
  0x65   :  { %126 = vsyncpa [#allocation3], 1 }
  0x66   :  { %127 = vsyncpa [#allocation6], 1 }
  0x67   :  { %128 = vsyncpa [#allocation4], 1 }

</bundles_post_ra>
